<compile_context>
chip_gen: v7x
topology: tpu7x:2x2x1
jax: 0.10.0
libtpu: 0.0.40
codegen_flags: <defaults>
</compile_context>

<pallas_src>
import math
import functools

import jax
import jax.numpy as jnp
from jax.experimental import pallas as pl
from jax.experimental.pallas import tpu as pltpu

LN_EPS = 1e-5
NEG_INF = -1e9                       # finite mask value: no NaN in softmax
VMEM_LIMIT = 56 * 1024 * 1024        # > default scoped VMEM (v5e/v6e), < v7x 64 MiB


# ----------------------------- BlockSpec helpers -----------------------------

def _const_spec(shape):
    """Constant-index-map operand (weights/biases/LN params/shared masks):
    fetched once; single-buffered to halve resident weight VMEM."""
    nd = len(shape)
    idx = lambda i, _nd=nd: (0,) * _nd
    try:
        return pl.BlockSpec(shape, idx, pipeline_mode=pl.Buffered(buffer_count=1))
    except (TypeError, AttributeError):  # fallback if pipeline_mode unavailable
        return pl.BlockSpec(shape, idx)


# ----------------------------- in-kernel helpers -----------------------------

def _layernorm(z, g, b):
    mu = jnp.mean(z, axis=-1, keepdims=True)
    d = z - mu
    var = jnp.mean(d * d, axis=-1, keepdims=True)
    return d * jax.lax.rsqrt(var + LN_EPS) * g + b


def _mha(xq, xkv, mask, wq, bq, wkv, bkv, wo, bo, nhead):
    """Multi-head attention.  Full-width (E / 2E wide) projections on the MXU,
    per-head score/softmax/PV on lane slices, one E-wide output projection."""
    E = xq.shape[-1]
    Dh = E // nhead
    scale = 1.0 / math.sqrt(Dh)

    q = jnp.dot(xq.astype(jnp.bfloat16), wq, preferred_element_type=jnp.float32) + bq
    kv = jnp.dot(xkv.astype(jnp.bfloat16), wkv, preferred_element_type=jnp.float32) + bkv
    q = (q * scale).astype(jnp.bfloat16)          # fold 1/sqrt(Dh) into Q once
    k = kv[:, :E].astype(jnp.bfloat16)
    v = kv[:, E:].astype(jnp.bfloat16)

    heads = []
    for h in range(nhead):                        # static unroll, static lane slices
        sl = slice(h * Dh, (h + 1) * Dh)
        s = jax.lax.dot_general(q[:, sl], k[:, sl], (((1,), (1,)), ((), ())),
                                preferred_element_type=jnp.float32)    # (Tq, Tk)
        s = s + mask                              # additive, finite
        s = s - jnp.max(s, axis=-1, keepdims=True)
        p = jnp.exp(s)
        # approx reciprocal runs on the EUP; tiny relative error vs exact divide
        p = p * pl.reciprocal(jnp.sum(p, axis=-1, keepdims=True), approx=True)
        heads.append(jnp.dot(p.astype(jnp.bfloat16), v[:, sl],
                             preferred_element_type=jnp.float32))      # (Tq, Dh)
    attn = jnp.concatenate(heads, axis=-1).astype(jnp.bfloat16)        # (Tq, E)
    return jnp.dot(attn, wo, preferred_element_type=jnp.float32) + bo


def _ffn(x, w1, b1, w2, b2):
    h = jnp.dot(x.astype(jnp.bfloat16), w1, preferred_element_type=jnp.float32) + b1
    h = jnp.maximum(h, 0.0).astype(jnp.bfloat16)
    return jnp.dot(h, w2, preferred_element_type=jnp.float32) + b2


# -------------------- fused encoder layer (one pallas_call) -------------------

def _encoder_layer_kernel(nhead,
                          x_ref, am_ref, pad_ref,
                          wq_ref, bq_ref, wkv_ref, bkv_ref, wo_ref, bo_ref,
                          g1_ref, be1_ref,
                          w1_ref, b1_ref, w2_ref, b2_ref,
                          g2_ref, be2_ref,
                          o_ref):
    x = x_ref[0]                                   # (S, E) f32
    mask = am_ref[...] + pad_ref[0]                # (S,S) + (1,S) -> (S,S)
    attn = _mha(x, x, mask, wq_ref[...], bq_ref[...], wkv_ref[...], bkv_ref[...],
                wo_ref[...], bo_ref[...], nhead)
    h = _layernorm(x + attn, g1_ref[...], be1_ref[...])
    y = _ffn(h, w1_ref[...], b1_ref[...], w2_ref[...], b2_ref[...])
    o_ref[0] = _layernorm(h + y, g2_ref[...], be2_ref[...])


def encoder_layer(x, attn2d, pad, p, nhead):
    B, S, E = x.shape
    dff = p["w1"].shape[1]
    sa = p["self_attn"]
    kernel = functools.partial(_encoder_layer_kernel, nhead)
    in_specs = [
        pl.BlockSpec((1, S, E), lambda b: (b, 0, 0)),      # x (per batch)
        _const_spec((S, S)),                               # shared attn mask
        pl.BlockSpec((1, 1, S), lambda b: (b, 0, 0)),      # key-padding row
        _const_spec((E, E)), _const_spec((1, E)),          # w_q / b_q
        _const_spec((E, 2 * E)), _const_spec((1, 2 * E)),  # w_kv / b_kv
        _const_spec((E, E)), _const_spec((1, E)),          # w_o / b_o
        _const_spec((1, E)), _const_spec((1, E)),          # norm1 g / b
        _const_spec((E, dff)), _const_spec((1, dff)),      # linear1
        _const_spec((dff, E)), _const_spec((1, E)),        # linear2
        _const_spec((1, E)), _const_spec((1, E)),          # norm2 g / b
    ]
    return pl.pallas_call(
        kernel,
        out_shape=jax.ShapeDtypeStruct((B, S, E), jnp.float32),
        grid=(B,),
        in_specs=in_specs,
        out_specs=pl.BlockSpec((1, S, E), lambda b: (b, 0, 0)),
        compiler_params=pltpu.CompilerParams(
            dimension_semantics=("parallel",), vmem_limit_bytes=VMEM_LIMIT),
    )(x, attn2d, pad,
      sa["w_q"], sa["b_q"], sa["w_kv"], sa["b_kv"], sa["w_o"], sa["b_o"],
      p["norm1"]["g"], p["norm1"]["b"],
      p["w1"], p["b1"], p["w2"], p["b2"],
      p["norm2"]["g"], p["norm2"]["b"])


# -------------------- fused decoder layer (one pallas_call) -------------------

def _decoder_layer_kernel(nhead,
                          x_ref, mem_ref, tam_ref, tpad_ref, mpad_ref,
                          swq_ref, sbq_ref, swkv_ref, sbkv_ref, swo_ref, sbo_ref,
                          g1_ref, be1_ref,
                          cwq_ref, cbq_ref, cwkv_ref, cbkv_ref, cwo_ref, cbo_ref,
                          g2_ref, be2_ref,
                          w1_ref, b1_ref, w2_ref, b2_ref,
                          g3_ref, be3_ref,
                          o_ref):
    x = x_ref[0]                                    # (T, E)
    mem = mem_ref[0]                                # (S, E)
    tmask = tam_ref[...] + tpad_ref[0]              # (T,T)
    h = _layernorm(
        x + _mha(x, x, tmask, swq_ref[...], sbq_ref[...], swkv_ref[...],
                 sbkv_ref[...], swo_ref[...], sbo_ref[...], nhead),
        g1_ref[...], be1_ref[...])
    h = _layernorm(
        h + _mha(h, mem, mpad_ref[0], cwq_ref[...], cbq_ref[...], cwkv_ref[...],
                 cbkv_ref[...], cwo_ref[...], cbo_ref[...], nhead),
        g2_ref[...], be2_ref[...])
    y = _ffn(h, w1_ref[...], b1_ref[...], w2_ref[...], b2_ref[...])
    o_ref[0] = _layernorm(h + y, g3_ref[...], be3_ref[...])


def decoder_layer(x, memory, tgt_am, tgt_pad, mem_pad, p, nhead):
    B, T, E = x.shape
    S = memory.shape[1]
    dff = p["w1"].shape[1]
    sa, ca = p["self_attn"], p["cross_attn"]
    kernel = functools.partial(_decoder_layer_kernel, nhead)
    in_specs = [
        pl.BlockSpec((1, T, E), lambda b: (b, 0, 0)),      # tgt
        pl.BlockSpec((1, S, E), lambda b: (b, 0, 0)),      # memory
        _const_spec((T, T)),                               # tgt attn mask
        pl.BlockSpec((1, 1, T), lambda b: (b, 0, 0)),      # tgt key-padding
        pl.BlockSpec((1, 1, S), lambda b: (b, 0, 0)),      # memory key-padding
        _const_spec((E, E)), _const_spec((1, E)),
        _const_spec((E, 2 * E)), _const_spec((1, 2 * E)),
        _const_spec((E, E)), _const_spec((1, E)),
        _const_spec((1, E)), _const_spec((1, E)),          # norm1
        _const_spec((E, E)), _const_spec((1, E)),
        _const_spec((E, 2 * E)), _const_spec((1, 2 * E)),
        _const_spec((E, E)), _const_spec((1, E)),
        _const_spec((1, E)), _const_spec((1, E)),          # norm2
        _const_spec((E, dff)), _const_spec((1, dff)),
        _const_spec((dff, E)), _const_spec((1, E)),
        _const_spec((1, E)), _const_spec((1, E)),          # norm3
    ]
    return pl.pallas_call(
        kernel,
        out_shape=jax.ShapeDtypeStruct((B, T, E), jnp.float32),
        grid=(B,),
        in_specs=in_specs,
        out_specs=pl.BlockSpec((1, T, E), lambda b: (b, 0, 0)),
        compiler_params=pltpu.CompilerParams(
            dimension_semantics=("parallel",), vmem_limit_bytes=VMEM_LIMIT),
    )(x, memory, tgt_am, tgt_pad, mem_pad,
      sa["w_q"], sa["b_q"], sa["w_kv"], sa["b_kv"], sa["w_o"], sa["b_o"],
      p["norm1"]["g"], p["norm1"]["b"],
      ca["w_q"], ca["b_q"], ca["w_kv"], ca["b_kv"], ca["w_o"], ca["b_o"],
      p["norm2"]["g"], p["norm2"]["b"],
      p["w1"], p["b1"], p["w2"], p["b2"],
      p["norm3"]["g"], p["norm3"]["b"])


# ------------------ final LayerNorm & positional add (tiled) ------------------

def _ln_kernel(x_ref, g_ref, b_ref, o_ref):
    o_ref[...] = _layernorm(x_ref[...], g_ref[...], b_ref[...])


def layernorm(x, ln, row_block=512):
    B, L, E = x.shape
    M = B * L
    TM = min(M, row_block)
    out = pl.pallas_call(
        _ln_kernel,
        out_shape=jax.ShapeDtypeStruct((M, E), jnp.float32),
        grid=(pl.cdiv(M, TM),),
        in_specs=[pl.BlockSpec((TM, E), lambda i: (i, 0)),
                  _const_spec((1, E)), _const_spec((1, E))],
        out_specs=pl.BlockSpec((TM, E), lambda i: (i, 0)),
        compiler_params=pltpu.CompilerParams(
            dimension_semantics=("parallel",), vmem_limit_bytes=VMEM_LIMIT),
    )(x.reshape(M, E), ln["g"], ln["b"])
    return out.reshape(B, L, E)


def _pos_add_kernel(x_ref, pe_ref, o_ref):
    o_ref[0] = x_ref[0] + pe_ref[...]


def pos_add(x, pe):
    """x: (B, L, E), pe: (L, E). Dropout of PositionalEncoding = identity (eval)."""
    B, L, E = x.shape
    return pl.pallas_call(
        _pos_add_kernel,
        out_shape=jax.ShapeDtypeStruct((B, L, E), jnp.float32),
        grid=(B,),
        in_specs=[pl.BlockSpec((1, L, E), lambda b: (b, 0, 0)),
                  _const_spec((L, E))],
        out_specs=pl.BlockSpec((1, L, E), lambda b: (b, 0, 0)),
        compiler_params=pltpu.CompilerParams(
            dimension_semantics=("parallel",), vmem_limit_bytes=VMEM_LIMIT),
    )(x, pe)


# ------------------------------ mask preparation ------------------------------

def _attn_mask_2d(attn_mask, Tq, Tk):
    """Shared (Tq, Tk) additive mask, finite values."""
    if attn_mask is None:
        return jnp.zeros((Tq, Tk), jnp.float32)
    am = attn_mask
    if am.dtype == jnp.bool_:
        am = jnp.where(am, NEG_INF, 0.0)
    return jnp.maximum(am.astype(jnp.float32), NEG_INF)


def _pad_mask_rows(kpm, B, Tk):
    """Per-batch (B, 1, Tk) additive key-padding rows, finite values."""
    if kpm is None:
        return jnp.zeros((B, 1, Tk), jnp.float32)
    if kpm.dtype == jnp.bool_:
        m = jnp.where(kpm, NEG_INF, 0.0)
    else:
        m = kpm
    return jnp.maximum(m.astype(jnp.float32), NEG_INF).reshape(B, 1, Tk)


# --------------------------------- full model ---------------------------------

def make_pos_embedding(emb_size, maxlen=150):
    den = jnp.exp(-jnp.arange(0, emb_size, 2, dtype=jnp.float32)
                  * (math.log(10000.0) / emb_size))
    pos = jnp.arange(0, maxlen, dtype=jnp.float32).reshape(maxlen, 1)
    pe = jnp.zeros((maxlen, emb_size), jnp.float32)
    pe = pe.at[:, 0::2].set(jnp.sin(pos * den))
    pe = pe.at[:, 1::2].set(jnp.cos(pos * den))
    return pe                                           # (maxlen, E)


def transformer_forward(params, src, tgt, src_mask, tgt_mask,
                        src_padding_mask, tgt_padding_mask,
                        memory_key_padding_mask, nhead=8, batch_first=False):
    # internal layout is batch-first (B, L, E)
    if not batch_first:
        src = jnp.transpose(src, (1, 0, 2))
        tgt = jnp.transpose(tgt, (1, 0, 2))
    B, S, E = src.shape
    T = tgt.shape[1]
    assert tgt.shape[0] == B and tgt.shape[2] == E

    pe = params["pos_embedding"]
    src_p = pos_add(src, pe[:S])
    tgt_p = pos_add(tgt, pe[:T])

    src_am = _attn_mask_2d(src_mask, S, S)
    tgt_am = _attn_mask_2d(tgt_mask, T, T)
    src_pad = _pad_mask_rows(src_padding_mask, B, S)
    tgt_pad = _pad_mask_rows(tgt_padding_mask, B, T)
    mem_pad = _pad_mask_rows(memory_key_padding_mask, B, S)

    mem = src_p
    for lp in params["encoder_layers"]:
        mem = encoder_layer(mem, src_am, src_pad, lp, nhead)
    mem = layernorm(mem, params["encoder_norm"])

    out = tgt_p
    for lp in params["decoder_layers"]:
        out = decoder_layer(out, mem, tgt_am, tgt_pad, mem_pad, lp, nhead)
    out = layernorm(out, params["decoder_norm"])

    if not batch_first:
        out = jnp.transpose(out, (1, 0, 2))
    return out


# ------------------------------ parameter init --------------------------------

def init_params(key, embed_size, nhead, num_layers, dff, maxlen=150):
    E = embed_size
    counter = [0]

    def nxt():
        counter[0] += 1
        return jax.random.fold_in(key, counter[0])

    def xavier_bf16(shape):
        bound = math.sqrt(6.0 / (shape[0] + shape[1]))
        w = jax.random.uniform(nxt(), shape, jnp.float32, -bound, bound)
        return w.astype(jnp.bfloat16)          # bf16 weights -> MXU-native path

    def zeros(shape):
        return jnp.zeros(shape, jnp.float32)

    def mha_params():
        return dict(w_q=xavier_bf16((E, E)), b_q=zeros((1, E)),
                    w_kv=jnp.concatenate([xavier_bf16((E, E)),
                                          xavier_bf16((E, E))], axis=1),
                    b_kv=zeros((1, 2 * E)),
                    w_o=xavier_bf16((E, E)), b_o=zeros((1, E)))

    def ln():
        return dict(g=jnp.ones((1, E), jnp.float32), b=zeros((1, E)))

    def ffn_params():
        return dict(w1=xavier_bf16((E, dff)), b1=zeros((1, dff)),
                    w2=xavier_bf16((dff, E)), b2=zeros((1, E)))

    def enc_layer():
        d = dict(self_attn=mha_params(), norm1=ln(), norm2=ln())
        d.update(ffn_params())
        return d

    def dec_layer():
        d = dict(self_attn=mha_params(), cross_attn=mha_params(),
                 norm1=ln(), norm2=ln(), norm3=ln())
        d.update(ffn_params())
        return d

    return dict(pos_embedding=make_pos_embedding(E, maxlen),
                encoder_layers=[enc_layer() for _ in range(num_layers)],
                decoder_layers=[dec_layer() for _ in range(num_layers)],
                encoder_norm=ln(), decoder_norm=ln())


# ----------------------------------- main --------------------------------------

if __name__ == "__main__":
    E, NHEAD, NUM_LAYERS, DFF = 32, 8, 2, 64
    S, T, B = 10, 8, 2

    root = jax.random.PRNGKey(0)
    k_src, k_tgt, k_par = jax.random.split(root, 3)

    src = jax.random.normal(k_src, (S, B, E), jnp.float32)
    tgt = jax.random.normal(k_tgt, (T, B, E), jnp.float32)

    src_mask = jnp.zeros((S, S), jnp.float32)
    tgt_mask = jnp.where(jnp.arange(T)[None, :] > jnp.arange(T)[:, None],
                         -jnp.inf, 0.0).astype(jnp.float32)   # causal mask
    src_padding_mask = jnp.zeros((B, S), dtype=bool)
    tgt_padding_mask = jnp.zeros((B, T), dtype=bool)
    memory_key_padding_mask = src_padding_mask

    params = init_params(k_par, E, NHEAD, NUM_LAYERS, DFF)

    out = transformer_forward(params, src, tgt, src_mask, tgt_mask,
                              src_padding_mask, tgt_padding_mask,
                              memory_key_padding_mask, nhead=NHEAD)
    out = jax.block_until_ready(out)
    assert out.shape == (T, B, E), out.shape
    assert bool(jnp.all(jnp.isfinite(out)))
    print("KERNEL_OK")
</pallas_src>

<mosaic_0001>
module attributes {stable_mosaic.version = 11 : i64} {
  func.func @_pos_add_kernel(%arg0: i32, %arg1: memref<1x10x32xf32, #tpu.memory_space<vmem>>, %arg2: memref<10x32xf32, #tpu.memory_space<vmem>>, %arg3: memref<1x10x32xf32, #tpu.memory_space<vmem>>) attributes {dimension_semantics = [#tpu.dimension_semantics<parallel>], iteration_bounds = array<i64: 2>, scalar_prefetch = 0 : i64, scratch_operands = 0 : i64, tpu.core_type = #tpu.core_type<tc>, window_params = [{transform_indices = @transform_0, window_bounds = array<i64: 1, 10, 32>}, {pipeline_mode = #tpu.pipeline_mode<synchronous>, transform_indices = @transform_1, window_bounds = array<i64: 10, 32>}, {transform_indices = @transform_2, window_bounds = array<i64: 1, 10, 32>}]} {
    %c0 = arith.constant 0 : index
    %c0_0 = arith.constant 0 : index
    %c0_1 = arith.constant 0 : index
    %0 = vector.load %arg1[%c0, %c0_0, %c0_1] : memref<1x10x32xf32, #tpu.memory_space<vmem>>, vector<1x10x32xf32>
    %1 = vector.shape_cast %0 : vector<1x10x32xf32> to vector<10x32xf32>
    %c0_2 = arith.constant 0 : index
    %c0_3 = arith.constant 0 : index
    %2 = vector.load %arg2[%c0_2, %c0_3] : memref<10x32xf32, #tpu.memory_space<vmem>>, vector<10x32xf32>
    %3 = arith.addf %1, %2 : vector<10x32xf32>
    %c0_4 = arith.constant 0 : index
    %c0_5 = arith.constant 0 : index
    %c0_6 = arith.constant 0 : index
    %4 = vector.load %arg3[%c0_4, %c0_5, %c0_6] : memref<1x10x32xf32, #tpu.memory_space<vmem>>, vector<1x10x32xf32>
    %5 = vector.shape_cast %4 : vector<1x10x32xf32> to vector<10x32xf32>
    %6 = vector.shape_cast %3 : vector<10x32xf32> to vector<1x10x32xf32>
    tpu.vector_store %arg3[%c0_4, %c0_5, %c0_6], %6 {strides = array<i32>} : memref<1x10x32xf32, #tpu.memory_space<vmem>>, vector<1x10x32xf32>,
    return
  }
  func.func @transform_0(%arg0: i32) -> (i32, i32, i32) {
    %c0_i32 = arith.constant 0 : i32
    %c0_i32_0 = arith.constant 0 : i32
    %c0_i32_1 = arith.constant 0 : i32
    return %arg0, %c0_i32, %c0_i32_0 : i32, i32, i32
  }
  func.func @transform_1(%arg0: i32) -> (i32, i32) {
    %c0_i32 = arith.constant 0 : i32
    %c0_i32_0 = arith.constant 0 : i32
    %c0_i32_1 = arith.constant 0 : i32
    return %c0_i32, %c0_i32_0 : i32, i32
  }
  func.func @transform_2(%arg0: i32) -> (i32, i32, i32) {
    %c0_i32 = arith.constant 0 : i32
    %c0_i32_0 = arith.constant 0 : i32
    %c0_i32_1 = arith.constant 0 : i32
    return %arg0, %c0_i32, %c0_i32_0 : i32, i32, i32
  }
}

</mosaic_0001>

<bundles_post_ra>
// kernel: tpu_custom_call.1
= control target key start
LH: loop header
LB: loop body
LE: loop exit
PB: predicated region body
PF: predicated region fallthrough
CT: control target
= control target key end

     0   :  { %s234_s9 = smov 0   ;;  %s265_s0 = inlined_call_operand.vmem [shape: f32[2,10,32], index: 0, kind: input, shape index: {}]   ;;  %s266_s1 = inlined_call_operand.vmem [shape: f32[10,32], index: 1, kind: input, shape index: {}]   ;;  %s267_s2 = inlined_call_operand.vmem [shape: f32[2,10,32], index: 2, kind: output, shape index: {}]  }
   0x1 LB: > { %s209_s10 = sadd.s32 4294967295, %s236_s9   ;;  %p213_p0 = scmp.ge.s32.totalorder %s236_s9, 1  ;;  %s236_s9 = sphi %s234_s9, %s12_s9  }
   0x2   : > { %p112_p1 = scmp.lt.s32.totalorder %s236_s9, 3 }
   0x4   : > { %p113_p2 = pnand %p213_p0, %p112_p1 }
   0x5   : > { %p134_p3 = scmp.lt.s32.totalorder (!%p113_p2), %s209_s10, 1  ;;  %v146_v0 = vld [vmem:[%s266_s1] sm:$0xff] (!%p113_p2)  ;;  %v147_v1 = vld [vmem:[%s266_s1 + $0x8] sm:$0x3] (!%p113_p2)  ;;  %vm150_vm0 = vcmask (!%p113_p2), 261120   ;;  %vm152_vm1 = vcmask (!%p113_p2), 254976  }
   0x6   : > { %116 = sbr.rel (%p113_p2) target bundleno = 21 (0x15), region = 28 }
   0xd   : > { %s269_s10 = smov (!%p134_p3, %s209_s10), 1 }
   0xe   : > { %s220_s11 = sshll.u32 %s269_s10, 4 }
   0xf   : > { %s138_s18 = scalar_lea.vmem %s265_s0, %s220_s11  ;;  %s143_s21 = scalar_lea.vmem %s267_s2, %s220_s11 }
  0x10   : > { %v144_v2 = vld [vmem:[%s138_s18] sm:$0xff]  ;;  %v145_v3 = vld [vmem:[%s138_s18 + $0x8] sm:$0x3] }
  0x11   : > { %v148_v4 = vadd.f32 %v146_v0, %v144_v2  ;;  %v149_v5 = vadd.f32 %v147_v1, %v145_v3 }
  0x13   : > { %151 = vst.msk [vmem:[%s143_s21] sm:$0xff] %vm150_vm0, %v148_v4 }
  0x14   : > { %153 = vst.msk [vmem:[%s143_s21 + $0x8] sm:$0x3] %vm152_vm1, %v149_v5 }
  0x15 PF: > { %s12_s9 = sadd.s32 1, %s236_s9  }
  0x16   : > { %p9_p4 = scmp.ge.s32.totalorder %s12_s9, 4  }
  0x18   :  { %11 = sbr.rel (!%p9_p4) target bundleno = 1 (0x1), region = 58 }

</bundles_post_ra>
